<compile_context>
chip_gen: v5e
topology: v5e:2x2
jax: 0.10.0
libtpu: 0.0.40
codegen_flags: <defaults>
</compile_context>

<pallas_src>
import functools
import math

import numpy as np
import jax
import jax.numpy as jnp
from jax.experimental import pallas as pl
from jax.experimental.pallas import tpu as pltpu


def _sepconv1d_kernel(x_ref, dw_ref, pw_ref, o_ref, xpad_ref, *,
                      K, TL, pad, base, L, tail_rows, copy_chunk, mxu_dtype):
    """One (batch, seq-tile) grid step.

    x_ref   : (L, C_in)            unpadded input, resident per batch element
    dw_ref  : (K, C_in)            depthwise taps, row k = tap k for every channel
    pw_ref  : (C_in, C_out)        pointwise weight, pre-cast to mxu_dtype
    o_ref   : (TL, C_out)          output tile (lane-dense, C_out multiple of 128)
    xpad_ref: (base+L+tail, C_in)  VMEM scratch holding the zero-padded sequence
    """
    t = pl.program_id(1)
    C_in = x_ref.shape[-1]

    # --- once per batch element: build the zero-padded sequence in VMEM scratch.
    @pl.when(t == 0)
    def _():
        if base > 0:                                   # left halo rows = 0
            xpad_ref[pl.ds(0, base), :] = jnp.zeros((base, C_in), xpad_ref.dtype)
        r = 0
        while r < L:                                   # body copy, chunked (static loop)
            c = min(copy_chunk, L - r)
            xpad_ref[pl.ds(base + r, c), :] = x_ref[pl.ds(r, c), :]
            r += c
        if tail_rows > 0:                              # right halo (+ grid tail) rows = 0
            xpad_ref[pl.ds(base + L, tail_rows), :] = jnp.zeros(
                (tail_rows, C_in), xpad_ref.dtype)

    off = pl.multiple_of(t * TL, TL)
    dw = dw_ref[...]                                   # (K, C_in)

    # --- depthwise conv: K shifted windows of the padded scratch, per-channel scale (VPU).
    acc = xpad_ref[pl.ds(off + (base - pad), TL), :] * dw[0:1, :]
    for k in range(1, K):                              # K is small; unrolled
        acc = acc + xpad_ref[pl.ds(off + (base - pad) + k, TL), :] * dw[k:k + 1, :]

    # --- pointwise conv: one MXU matmul per tile (bf16 operands, f32 accumulation).
    out = jnp.dot(acc.astype(mxu_dtype), pw_ref[...],
                  preferred_element_type=jnp.float32)
    o_ref[...] = out.astype(o_ref.dtype)


def _pick_seq_tile(L_out, seq_tile):
    """Prefer a tile that divides L_out exactly (no padded output rows / no
    trailing slice); otherwise fall back to padding the output rows."""
    for cand in (seq_tile, 256, 128, 64, 32, 16, 8):
        if cand is None or cand <= 0:
            continue
        cand = (cand // 8) * 8
        if cand >= 8 and L_out % cand == 0:
            return cand
    return min(max(8, (seq_tile // 8) * 8), max(8, -(-L_out // 8) * 8))


def separable_conv1d_forward(x, depthwise_weight, pointwise_weight, *,
                             kernel_size, padding=None, seq_tile=256,
                             mxu_dtype=jnp.bfloat16):
    """Reproduces SeparableConv1d.forward on channels-last input.

    x:                (B, L, C_in)
    depthwise_weight: (C_in, 1, K)      -- PyTorch nn.Conv1d(groups=C_in) layout
    pointwise_weight: (C_out, C_in, 1)  -- PyTorch nn.Conv1d(kernel_size=1) layout

    Best performance when C_in and C_out are multiples of 128 (lane-dense
    loads/stores); other channel counts still work but use masked stores.
    """
    B, L, C_in = x.shape
    K = kernel_size
    pad = (K - 1) // 2 if padding is None else padding
    C_out = pointwise_weight.shape[0]
    L_out = L + 2 * pad - K + 1                        # stride = 1

    TL = _pick_seq_tile(L_out, seq_tile)
    n_t = -(-L_out // TL)
    L_out_grid = n_t * TL                              # == L_out on the fast path

    pad_hi = K - 1 - pad                               # right halo rows
    base = ((pad + 7) // 8) * 8 if pad > 0 else 0      # sublane-aligned left halo
    tail_rows = L_out_grid + pad_hi - L                # right halo (+ grid tail) rows
    scratch_rows = base + L + tail_rows

    # Weights packed lane-dense (last dim = channels).  Pointwise weight is
    # pre-cast to the MXU dtype host-side, once, instead of per grid step.
    dw = jnp.transpose(depthwise_weight[:, 0, :], (1, 0)).astype(x.dtype)     # (K, C_in)
    pw = jnp.transpose(pointwise_weight[:, :, 0], (1, 0)).astype(mxu_dtype)   # (C_in, C_out)

    kernel = functools.partial(
        _sepconv1d_kernel, K=K, TL=TL, pad=pad, base=base, L=L,
        tail_rows=tail_rows, copy_chunk=256, mxu_dtype=mxu_dtype)

    out = pl.pallas_call(
        kernel,
        out_shape=jax.ShapeDtypeStruct((B, L_out_grid, C_out), x.dtype),
        grid=(B, n_t),
        in_specs=[
            # Full (unpadded) sequence of one batch element; the block index
            # ignores t, so it stays resident in VMEM across the seq-tile axis.
            pl.BlockSpec((None, L, C_in), lambda b, t: (b, 0, 0)),
            pl.BlockSpec((K, C_in), lambda b, t: (0, 0)),
            pl.BlockSpec((C_in, C_out), lambda b, t: (0, 0)),
        ],
        out_specs=pl.BlockSpec((None, TL, C_out), lambda b, t: (b, t, 0)),
        scratch_shapes=[pltpu.VMEM((scratch_rows, C_in), x.dtype)],
        compiler_params=pltpu.CompilerParams(
            dimension_semantics=("parallel", "arbitrary")),
    )(x, dw, pw)

    if L_out_grid != L_out:                            # only on the ragged fallback path
        out = out[:, :L_out, :]
    return out


def ref_forward(x, depthwise_weight, pointwise_weight, *, kernel_size, padding=None):
    """Pure-JAX reference mirroring the PyTorch module (no Pallas)."""
    B, L, C_in = x.shape
    K = kernel_size
    pad = (K - 1) // 2 if padding is None else padding
    L_out = L + 2 * pad - K + 1
    xp = jnp.pad(x, ((0, 0), (pad, pad), (0, 0)))
    dw = jnp.transpose(depthwise_weight[:, 0, :], (1, 0))       # (K, C_in)
    y = jnp.zeros((B, L_out, C_in), jnp.float32)
    for k in range(K):
        y = y + xp[:, k:k + L_out, :] * dw[k][None, None, :]
    pw = jnp.transpose(pointwise_weight[:, :, 0], (1, 0))       # (C_in, C_out)
    return jnp.einsum('blc,cd->bld', y, pw)


if __name__ == "__main__":
    # in_channels = out_channels = 128 (one lane width), kernel_size = 3,
    # stride = 1, bias = False  -->  matches the module defaults.
    B, L, C_in, C_out, K = 2, 512, 128, 128, 3

    key = jax.random.PRNGKey(0)
    kx, kd, kp = jax.random.split(key, 3)
    x = jax.random.normal(kx, (B, L, C_in), jnp.float32)

    bd = 1.0 / math.sqrt(K)                 # depthwise fan_in = 1 * K
    dw_w = jax.random.uniform(kd, (C_in, 1, K), jnp.float32, -bd, bd)
    bp = 1.0 / math.sqrt(C_in)              # pointwise fan_in = C_in * 1
    pw_w = jax.random.uniform(kp, (C_out, C_in, 1), jnp.float32, -bp, bp)

    out = separable_conv1d_forward(x, dw_w, pw_w, kernel_size=K)
    out = jax.block_until_ready(out)

    ref = ref_forward(x, dw_w, pw_w, kernel_size=K)
    # bf16 MXU operands with f32 accumulation -> relax tolerance accordingly.
    np.testing.assert_allclose(np.asarray(out), np.asarray(ref),
                               rtol=1e-2, atol=1e-2)
    print("KERNEL_OK")
</pallas_src>

<mosaic_0001>
module attributes {stable_mosaic.version = 11 : i64} {
  func.func @_sepconv1d_kernel(%arg0: i32, %arg1: i32, %arg2: memref<1x512x128xf32, #tpu.memory_space<vmem>>, %arg3: memref<3x128xf32, #tpu.memory_space<vmem>>, %arg4: memref<128x128xbf16, #tpu.memory_space<vmem>>, %arg5: memref<1x256x128xf32, #tpu.memory_space<vmem>>, %arg6: memref<521x128xf32, #tpu.memory_space<vmem>>) attributes {dimension_semantics = [#tpu.dimension_semantics<parallel>, #tpu.dimension_semantics<arbitrary>], iteration_bounds = array<i64: 2, 2>, scalar_prefetch = 0 : i64, scratch_operands = 1 : i64, tpu.core_type = #tpu.core_type<tc>, window_params = [{transform_indices = @transform_0, window_bounds = array<i64: 1, 512, 128>}, {pipeline_mode = #tpu.pipeline_mode<synchronous>, transform_indices = @transform_1, window_bounds = array<i64: 3, 128>}, {pipeline_mode = #tpu.pipeline_mode<synchronous>, transform_indices = @transform_2, window_bounds = array<i64: 128, 128>}, {transform_indices = @transform_3, window_bounds = array<i64: 1, 256, 128>}]} {
    %c0_i32 = arith.constant 0 : i32
    %0 = arith.cmpi eq, %arg1, %c0_i32 : i32
    %1 = arith.extui %0 : i1 to i32
    %c0_i32_0 = arith.constant 0 : i32
    %2 = arith.cmpi ne, %1, %c0_i32_0 : i32
    scf.if %2 {
      %cst_12 = arith.constant 0.000000e+00 : f32
      %34 = vector.broadcast %cst_12 : f32 to vector<8x128xf32>
      %c0_13 = arith.constant 0 : index
      %c0_14 = arith.constant 0 : index
      %35 = vector.load %arg6[%c0_13, %c0_14] : memref<521x128xf32, #tpu.memory_space<vmem>>, vector<8x128xf32>
      tpu.vector_store %arg6[%c0_13, %c0_14], %34 {strides = array<i32>} : memref<521x128xf32, #tpu.memory_space<vmem>>, vector<8x128xf32>,
      %c0_15 = arith.constant 0 : index
      %c0_16 = arith.constant 0 : index
      %c0_17 = arith.constant 0 : index
      %36 = vector.load %arg2[%c0_15, %c0_16, %c0_17] : memref<1x512x128xf32, #tpu.memory_space<vmem>>, vector<1x256x128xf32>
      %37 = vector.shape_cast %36 : vector<1x256x128xf32> to vector<256x128xf32>
      %c8 = arith.constant 8 : index
      %c0_18 = arith.constant 0 : index
      %38 = vector.load %arg6[%c8, %c0_18] : memref<521x128xf32, #tpu.memory_space<vmem>>, vector<256x128xf32>
      tpu.vector_store %arg6[%c8, %c0_18], %37 {strides = array<i32>} : memref<521x128xf32, #tpu.memory_space<vmem>>, vector<256x128xf32>,
      %c0_19 = arith.constant 0 : index
      %c256 = arith.constant 256 : index
      %c0_20 = arith.constant 0 : index
      %39 = vector.load %arg2[%c0_19, %c256, %c0_20] : memref<1x512x128xf32, #tpu.memory_space<vmem>>, vector<1x256x128xf32>
      %40 = vector.shape_cast %39 : vector<1x256x128xf32> to vector<256x128xf32>
      %c264 = arith.constant 264 : index
      %c0_21 = arith.constant 0 : index
      %41 = vector.load %arg6[%c264, %c0_21] : memref<521x128xf32, #tpu.memory_space<vmem>>, vector<256x128xf32>
      tpu.vector_store %arg6[%c264, %c0_21], %40 {strides = array<i32>} : memref<521x128xf32, #tpu.memory_space<vmem>>, vector<256x128xf32>,
      %cst_22 = arith.constant 0.000000e+00 : f32
      %42 = vector.broadcast %cst_22 : f32 to vector<1x128xf32>
      %c520 = arith.constant 520 : index
      %c0_23 = arith.constant 0 : index
      %43 = vector.load %arg6[%c520, %c0_23] : memref<521x128xf32, #tpu.memory_space<vmem>>, vector<1x128xf32>
      tpu.vector_store %arg6[%c520, %c0_23], %42 {strides = array<i32>} : memref<521x128xf32, #tpu.memory_space<vmem>>, vector<1x128xf32>,
    } else {
    }
    %c256_i32 = arith.constant 256 : i32
    %3 = arith.muli %arg1, %c256_i32 : i32
    %4 = tpu.assume_multiple %3, 256 : i32
    %c0 = arith.constant 0 : index
    %c0_1 = arith.constant 0 : index
    %5 = vector.load %arg3[%c0, %c0_1] : memref<3x128xf32, #tpu.memory_space<vmem>>, vector<3x128xf32>
    %c7_i32 = arith.constant 7 : i32
    %6 = arith.addi %4, %c7_i32 : i32
    %7 = arith.index_cast %6 : i32 to index
    %c0_2 = arith.constant 0 : index
    %8 = vector.load %arg6[%7, %c0_2] : memref<521x128xf32, #tpu.memory_space<vmem>>, vector<256x128xf32>
    %9 = vector.extract_strided_slice %5 {offsets = [0, 0], sizes = [1, 128], strides = [1, 1]} : vector<3x128xf32> to vector<1x128xf32>
    %10 = vector.broadcast %9 : vector<1x128xf32> to vector<256x128xf32>
    %11 = arith.mulf %8, %10 : vector<256x128xf32>
    %c7_i32_3 = arith.constant 7 : i32
    %12 = arith.addi %4, %c7_i32_3 : i32
    %c1_i32 = arith.constant 1 : i32
    %13 = arith.addi %12, %c1_i32 : i32
    %14 = arith.index_cast %13 : i32 to index
    %c0_4 = arith.constant 0 : index
    %15 = vector.load %arg6[%14, %c0_4] : memref<521x128xf32, #tpu.memory_space<vmem>>, vector<256x128xf32>
    %16 = vector.extract_strided_slice %5 {offsets = [1, 0], sizes = [1, 128], strides = [1, 1]} : vector<3x128xf32> to vector<1x128xf32>
    %17 = vector.broadcast %16 : vector<1x128xf32> to vector<256x128xf32>
    %18 = arith.mulf %15, %17 : vector<256x128xf32>
    %19 = arith.addf %11, %18 : vector<256x128xf32>
    %c7_i32_5 = arith.constant 7 : i32
    %20 = arith.addi %4, %c7_i32_5 : i32
    %c2_i32 = arith.constant 2 : i32
    %21 = arith.addi %20, %c2_i32 : i32
    %22 = arith.index_cast %21 : i32 to index
    %c0_6 = arith.constant 0 : index
    %23 = vector.load %arg6[%22, %c0_6] : memref<521x128xf32, #tpu.memory_space<vmem>>, vector<256x128xf32>
    %24 = vector.extract_strided_slice %5 {offsets = [2, 0], sizes = [1, 128], strides = [1, 1]} : vector<3x128xf32> to vector<1x128xf32>
    %25 = vector.broadcast %24 : vector<1x128xf32> to vector<256x128xf32>
    %26 = arith.mulf %23, %25 : vector<256x128xf32>
    %27 = arith.addf %19, %26 : vector<256x128xf32>
    %28 = arith.truncf %27 : vector<256x128xf32> to vector<256x128xbf16>
    %c0_7 = arith.constant 0 : index
    %c0_8 = arith.constant 0 : index
    %29 = vector.load %arg4[%c0_7, %c0_8] : memref<128x128xbf16, #tpu.memory_space<vmem>>, vector<128x128xbf16>
    %cst = arith.constant dense<0.000000e+00> : vector<256x128xf32>
    %30 = tpu.matmul %28, %29, %cst {dimension_numbers = #tpu.dot_dimension_numbers<[1], [0], [0], [1], [0, 0, 1, 1], [], []>} : vector<256x128xbf16>, vector<128x128xbf16>, vector<256x128xf32> -> vector<256x128xf32>
    %c0_9 = arith.constant 0 : index
    %c0_10 = arith.constant 0 : index
    %c0_11 = arith.constant 0 : index
    %31 = vector.load %arg5[%c0_9, %c0_10, %c0_11] : memref<1x256x128xf32, #tpu.memory_space<vmem>>, vector<1x256x128xf32>
    %32 = vector.shape_cast %31 : vector<1x256x128xf32> to vector<256x128xf32>
    %33 = vector.shape_cast %30 : vector<256x128xf32> to vector<1x256x128xf32>
    tpu.vector_store %arg5[%c0_9, %c0_10, %c0_11], %33 {strides = array<i32>} : memref<1x256x128xf32, #tpu.memory_space<vmem>>, vector<1x256x128xf32>,
    return
  }
  func.func @transform_0(%arg0: i32, %arg1: i32) -> (i32, i32, i32) {
    %c0_i32 = arith.constant 0 : i32
    %c0_i32_0 = arith.constant 0 : i32
    %c0_i32_1 = arith.constant 0 : i32
    return %arg0, %c0_i32, %c0_i32_0 : i32, i32, i32
  }
  func.func @transform_1(%arg0: i32, %arg1: i32) -> (i32, i32) {
    %c0_i32 = arith.constant 0 : i32
    %c0_i32_0 = arith.constant 0 : i32
    %c0_i32_1 = arith.constant 0 : i32
    return %c0_i32, %c0_i32_0 : i32, i32
  }
  func.func @transform_2(%arg0: i32, %arg1: i32) -> (i32, i32) {
    %c0_i32 = arith.constant 0 : i32
    %c0_i32_0 = arith.constant 0 : i32
    %c0_i32_1 = arith.constant 0 : i32
    return %c0_i32, %c0_i32_0 : i32, i32
  }
  func.func @transform_3(%arg0: i32, %arg1: i32) -> (i32, i32, i32) {
    %c0_i32 = arith.constant 0 : i32
    %c0_i32_0 = arith.constant 0 : i32
    return %arg0, %arg1, %c0_i32 : i32, i32, i32
  }
}

</mosaic_0001>

<bundles_post_ra>
// kernel: tpu_custom_call.1
= control target key start
LH: loop header
LB: loop body
LE: loop exit
PB: predicated region body
PF: predicated region fallthrough
CT: control target
= control target key end

     0   :  { %s2043_s0 = inlined_call_operand.hbm [shape: f32[2,512,128], index: 0, kind: input, shape index: {}]   ;;  %s2044_s1 = inlined_call_operand.hbm [shape: f32[3,128], index: 1, kind: input, shape index: {}]   ;;  %s2045_s2 = inlined_call_operand.hbm [shape: bf16[128,128], index: 2, kind: input, shape index: {}]   ;;  %s2046_s3 = inlined_call_operand.hbm [shape: f32[2,512,128], index: 3, kind: output, shape index: {}]  }
   0x1   :  { %2053 = sst [smem:[#allocation18_spill]] %s2044_s1 }
   0x2   :  { %2054 = sst [smem:[#allocation19_spill]] %s2045_s2 }
   0x3   :  { %8 = vsyncpa [#allocation4], 0 }
   0x4   :  { %10 = vsyncpa [#allocation4 + $0x1], 0 }
   0x5   :  { %11 = vsyncpa [#allocation7], 0 }
   0x6   :  { %12 = vsyncpa [#allocation5], 0 }
   0x7   :  { %14 = vsyncpa [#allocation5 + $0x1], 0  ;;  %s1534_s12 = smov 0   ;;  %s1536_s13 = smov 0  }
   0x8   :  { %s1538_s14 = smov 0   ;;  %s1540_s15 = smov 0  }
   0x9   :  { %s1542_s16 = smov 0   ;;  %s1544_s17 = smov 0  }
   0xa   :  { %s1546_s18 = smov 0   ;;  %s1548_s19 = smov 0  }
   0xb   :  { %s1550_s20 = smov 0   ;;  %s1552_s21 = smov 0  }
   0xc   :  { %s1554_s22 = smov 0  }
   0xd LB: > { %2055 = sst [smem:[#allocation13_spill]] %s1463_s12  ;;  %s972_s23 = sadd.s32 4294967295, %s1503_s22   ;;  %s1503_s22 = sphi %s1554_s22, %s2085_s22   ;;  %s1499_s21 = sphi %s1552_s21, %s2084_s21   ;;  %s1495_s20 = sphi %s1550_s20, %s2083_s20   ;;  %s1491_s19 = sphi %s1548_s19, %s2082_s19   ;;  %s1487_s18 = sphi %s1546_s18, %s2074_s18   ;;  %s1483_s17 = sphi %s1544_s17, %s2081_s17   ;;  %s1479_s16 = sphi %s1542_s16, %s2080_s16   ;;  %s1475_s15 = sphi %s1540_s15, %s2079_s15   ;;  %s1471_s14 = sphi %s1538_s14, %s2078_s14   ;;  %s1467_s13 = sphi %s1536_s13, %s2077_s13   ;;  %s1463_s12 = sphi %s1534_s12, %s2076_s12  }
   0xe   : > { %2056 = sst [smem:[#allocation14_spill]] %s1495_s20  ;;  %s973_s24 = sadd.s32 4294967294, %s1503_s22  }
   0xf   : > { %2057 = sst [smem:[#allocation15_spill]] %s1503_s22  ;;  %p46_p0 = scmp.ne.s32.totalorder %s1483_s17, %s1479_s16 }
  0x10   : > { %p47_p1 = scmp.eq.s32.totalorder %s1503_s22, 0  ;;  %p52_p2 = scmp.ne.s32.totalorder %s1479_s16, %s1475_s15 }
  0x11   : > { %p1594_p3 = scmp.eq.s32.totalorder %s972_s23, 0  ;;  %p119_p5 = scmp.ne.s32.totalorder %s1471_s14, %s1467_s13 }
  0x12   : > { %p1599_p4 = por %p47_p1, %p46_p0  ;;  %p120_p7 = scmp.eq.s32.totalorder %s972_s23, 3 }
  0x13   : > { %p1607_p6 = por %p1594_p3, %p52_p2  ;;  %p125_p8 = scmp.ne.s32.totalorder %s1467_s13, %s1463_s12 }
  0x14   : > { %p126_p9 = scmp.eq.s32.totalorder %s973_s24, 3  ;;  %p1613_p10 = por %p120_p7, %p119_p5 }
  0x15   : > { %p974_p11 = scmp.ge.s32.totalorder %s1503_s22, 1  ;;  %p133_p13 = scmp.lt.s32.totalorder %s1503_s22, 5 }
  0x16   : > { %p1618_p12 = por %p126_p9, %p125_p8  ;;  %s2064_s1 = sld [smem:[#allocation18_spill]] }
  0x17   : > { %p1626_p0 = pnand %p974_p11, %p133_p13  ;;  %s1505_s9 = smov [#allocation6]  }
  0x18   : > { %s2062_s4 = scalar_select %p1618_p12, 1, 0 }
  0x19   : > { %p1169_p1 = pneg %p1626_p0  ;;  %s147_s10 = sshll.u32 %s1505_s9, 4  ;;  %s148_s10 = int_to_ptr.vmem [resolvable:$true] %s147_s10 }
  0x1a   : > { %2063 = sst [smem:[#allocation16_spill]] %s2062_s4  ;;  %p1186_p2 = scmp.lt.s32.totalorder %s1503_s22, 4 }
  0x1b   : > { %p1170_p5 = pnand %p1169_p1, %p1594_p3  ;;  %s2066_s2 = sld [smem:[#allocation19_spill]] }
  0x1c   : > { %s145_s7 = sshll.u32 %s2064_s1, 4  ;;  %p1640_p7 = pnand %p1186_p2, %p1599_p4  ;;  %s146_s7 = int_to_ptr.hbm [resolvable:$true] %s145_s7 }
  0x1d   : > { %1172 = dma.hbm_to_vmem [thread:$0]  (!%p1170_p5), %s146_s7, 64, %s148_s10, [#allocation7]  }
  0x1e   : > { %s1506_s5 = smov [#allocation8]   ;;  %s1507_s9 = smov 64  }
  0x1f   : > { %s158_s6 = sshll.u32 %s1506_s5, 4  ;;  %s1508_s27 = smov 4   ;;  %s159_s6 = int_to_ptr.vmem [resolvable:$true] %s158_s6 }
  0x20   : > { %s29_s25 = sadd.s32 1, %s1495_s20  ;;  %s32_s11 = sadd.s32 1, %s1499_s21 }
  0x21   : > { %s156_s23 = sshll.u32 %s2066_s2, 4  ;;  %p30_p8 = scmp.ge.s32.totalorder %s29_s25, 2  ;;  %s157_s23 = int_to_ptr.hbm [resolvable:$true] %s156_s23 }
  0x22   : > { %1175 = dma.hbm_to_vmem [thread:$0]  (!%p1170_p5), %s157_s23, 1024, %s159_s6, [#allocation7], %s1507_s9, %s1507_s9, %s1508_s27  }
  0x23   : > { %s172_s15 = sand.u32 1, %s1483_s17   ;;  %s1124_s28 = sshll.u32 %s1499_s21, 9 }
  0x24   : > { %s2087_s25 = smov (%p30_p8, %s29_s25), 0  ;;  %s2089_s11 = smov (!%p30_p8, %s32_s11), %s1499_s21 }
  0x25   : > { %2068 = sst [smem:[#allocation17_spill]] %s2087_s25  ;;  %s105_s7 = ssub.s32 %s1495_s20, %s2087_s25 }
  0x26   : > { %p34_p4 = scmp.ge.s32.totalorder %s2089_s11, 2  ;;  %s978_s10 = sshll.u32 %s172_s15, 9 }
  0x27   : > { %s181_s27 = scalar_lea.hbm %s2043_s0, %s1124_s28  ;;  %s176_s6 = scalar_lea.vmem [#allocation3], %s978_s10 }
  0x28   : > { %s2091_s11 = smov (%p34_p4, %s2089_s11), 0  ;;  %s182_s23 = sshll.u32 %s181_s27, 4  ;;  %s183_s23 = int_to_ptr.hbm [resolvable:$true] %s182_s23 }
  0x29   : > { %s184_s9 = sshll.u32 %s176_s6, 4  ;;  %s36_s2 = ssub.s32 %s1499_s21, %s2091_s11  ;;  %s185_s9 = int_to_ptr.vmem [resolvable:$true] %s184_s9 }
  0x2a   : > { %p37_p9 = scmp.eq.s32.totalorder %s36_s2, 0  ;;  %s106_s4 = sor.u32 %s105_s7, %s36_s2 }
  0x2b   : > { %p107_p11 = scmp.eq.s32.totalorder %s106_s4, 0  ;;  %s2069_s25 = sadd.s32 1, %s1483_s17 }
  0x2c   : > { %s1663_s20 = scalar_select %p37_p9, %s1483_s17, %s2069_s25  }
  0x2d   : > { %s2070_s12 = sadd.s32 1, %s1471_s14  ;;  %s173_s1 = scalar_lea.sflag [#allocation4], %s172_s15 }
  0x2e   : > { %s1668_s22 = scalar_select %p107_p11, %s1471_s14, %s2070_s12  }
  0x2f   : > { %s1509_s28 = smov 128   ;;  %s1510_s5 = smov 8  }
  0x30   : > { %1179 = dma.hbm_to_vmem [thread:$0]  (!%p1640_p7), %s183_s23, 8192, %s185_s9, %s173_s1, %s1509_s28, %s1509_s28, %s1510_s5  }
  0x31   : > { %196 = sbr.rel (%p1626_p0) target bundleno = 357 (0x165), region = 32  ;;  %s198_s10 = sand.u32 (!%p1626_p0), 1, %s1479_s16  }
  0x32   : > { %s982_s2 = sshll.u32 (!%p1626_p0), %s198_s10, 9  ;;  %s199_s4 = scalar_lea.sflag (!%p1626_p0), [#allocation4], %s198_s10 }
  0x33   : > { %s1675_s7 = scalar_lea.vmem (!%p1626_p0), [#allocation3], %s982_s2 }
  0x36   : > { %1450 = dma.done.wait (%p1607_p6), %s199_s4, 8192  }
  0x37   : > { %1452 = vsyncadd (%p1607_p6), %s199_s4, 4294959104 }
  0x38   : > { %1454 = dma.done.wait (%p1594_p3), [#allocation7], 1088  }
  0x39   : > { %1456 = vsyncadd (%p1594_p3), [#allocation7], 4294966208  ;;  %s233_s12 = sand.u32 1, %s1467_s13   ;;  %p986_p13 = scmp.ne.s32.totalorder %s1487_s18, 0 }
  0x3a   : > { %s985_s25 = sshll.u32 %s233_s12, 8 }
  0x3b   : > { %s1688_s8 = scalar_lea.vmem [#allocation9], %s985_s25  ;;  %240 = sbr.rel (%p986_p13) target bundleno = 131 (0x83), region = 48 }
  0x40   : > { %v242_v0 = vld [vmem:[%s1675_s7] sm:$0xff]  ;;  %v1511_v1 = vmov 0.0   ;;  %v243_v2 = vld [vmem:[%s1675_s7 + $0x8] sm:$0xff]  ;;  %v244_v3 = vld [vmem:[%s1675_s7 + $0x10] sm:$0xff] }
  0x41   : > { %241 = vst [vmem:[#allocation2] sm:$0xff] %v1511_v1  ;;  %v245_v4 = vld [vmem:[%s1675_s7 + $0x18] sm:$0xff]  ;;  %v246_v5 = vld [vmem:[%s1675_s7 + $0x20] sm:$0xff]  ;;  %v247_v6 = vld [vmem:[%s1675_s7 + $0x28] sm:$0xff] }
  0x42   : > { %370 = vst [vmem:[#allocation2 + $0x208] sm:$0x1] %v1511_v1  ;;  %v248_v7 = vld [vmem:[%s1675_s7 + $0x30] sm:$0xff]  ;;  %v249_v8 = vld [vmem:[%s1675_s7 + $0x38] sm:$0xff]  ;;  %v250_v9 = vld [vmem:[%s1675_s7 + $0x40] sm:$0xff] }
  0x43   : > { %274 = vst [vmem:[#allocation2 + $0x8] sm:$0xff] %v242_v0  ;;  %v251_v10 = vld [vmem:[%s1675_s7 + $0x48] sm:$0xff]  ;;  %v252_v11 = vld [vmem:[%s1675_s7 + $0x50] sm:$0xff]  ;;  %v253_v12 = vld [vmem:[%s1675_s7 + $0x58] sm:$0xff] }
  0x44   : > { %275 = vst [vmem:[#allocation2 + $0x10] sm:$0xff] %v243_v2  ;;  %v254_v13 = vld [vmem:[%s1675_s7 + $0x60] sm:$0xff]  ;;  %v255_v14 = vld [vmem:[%s1675_s7 + $0x68] sm:$0xff]  ;;  %v256_v15 = vld [vmem:[%s1675_s7 + $0x70] sm:$0xff] }
  0x45   : > { %276 = vst [vmem:[#allocation2 + $0x18] sm:$0xff] %v244_v3  ;;  %v257_v16 = vld [vmem:[%s1675_s7 + $0x78] sm:$0xff]  ;;  %v258_v17 = vld [vmem:[%s1675_s7 + $0x80] sm:$0xff]  ;;  %v259_v18 = vld [vmem:[%s1675_s7 + $0x88] sm:$0xff] }
  0x46   : > { %277 = vst [vmem:[#allocation2 + $0x20] sm:$0xff] %v245_v4  ;;  %v260_v19 = vld [vmem:[%s1675_s7 + $0x90] sm:$0xff]  ;;  %v261_v20 = vld [vmem:[%s1675_s7 + $0x98] sm:$0xff]  ;;  %v262_v21 = vld [vmem:[%s1675_s7 + $0xa0] sm:$0xff] }
  0x47   : > { %278 = vst [vmem:[#allocation2 + $0x28] sm:$0xff] %v246_v5  ;;  %v263_v22 = vld [vmem:[%s1675_s7 + $0xa8] sm:$0xff]  ;;  %v264_v23 = vld [vmem:[%s1675_s7 + $0xb0] sm:$0xff]  ;;  %v265_v24 = vld [vmem:[%s1675_s7 + $0xb8] sm:$0xff] }
  0x48   : > { %279 = vst [vmem:[#allocation2 + $0x30] sm:$0xff] %v247_v6  ;;  %v266_v25 = vld [vmem:[%s1675_s7 + $0xc0] sm:$0xff]  ;;  %v267_v26 = vld [vmem:[%s1675_s7 + $0xc8] sm:$0xff]  ;;  %v268_v27 = vld [vmem:[%s1675_s7 + $0xd0] sm:$0xff] }
  0x49   : > { %280 = vst [vmem:[#allocation2 + $0x38] sm:$0xff] %v248_v7  ;;  %v269_v28 = vld [vmem:[%s1675_s7 + $0xd8] sm:$0xff]  ;;  %v270_v29 = vld [vmem:[%s1675_s7 + $0xe0] sm:$0xff]  ;;  %v271_v30 = vld [vmem:[%s1675_s7 + $0xe8] sm:$0xff] }
  0x4a   : > { %281 = vst [vmem:[#allocation2 + $0x40] sm:$0xff] %v249_v8  ;;  %v272_v31 = vld [vmem:[%s1675_s7 + $0xf0] sm:$0xff]  ;;  %v273_v32 = vld [vmem:[%s1675_s7 + $0xf8] sm:$0xff]  ;;  %v306_v33 = vld [vmem:[%s1675_s7 + $0x100] sm:$0xff] }
  0x4b   : > { %282 = vst [vmem:[#allocation2 + $0x48] sm:$0xff] %v250_v9  ;;  %v307_v34 = vld [vmem:[%s1675_s7 + $0x108] sm:$0xff]  ;;  %v308_v35 = vld [vmem:[%s1675_s7 + $0x110] sm:$0xff]  ;;  %v309_v36 = vld [vmem:[%s1675_s7 + $0x118] sm:$0xff] }
  0x4c   : > { %283 = vst [vmem:[#allocation2 + $0x50] sm:$0xff] %v251_v10  ;;  %v310_v37 = vld [vmem:[%s1675_s7 + $0x120] sm:$0xff]  ;;  %v311_v38 = vld [vmem:[%s1675_s7 + $0x128] sm:$0xff]  ;;  %v312_v39 = vld [vmem:[%s1675_s7 + $0x130] sm:$0xff] }
  0x4d   : > { %284 = vst [vmem:[#allocation2 + $0x58] sm:$0xff] %v252_v11  ;;  %v313_v40 = vld [vmem:[%s1675_s7 + $0x138] sm:$0xff]  ;;  %v314_v41 = vld [vmem:[%s1675_s7 + $0x140] sm:$0xff]  ;;  %v315_v42 = vld [vmem:[%s1675_s7 + $0x148] sm:$0xff] }
  0x4e   : > { %285 = vst [vmem:[#allocation2 + $0x60] sm:$0xff] %v253_v12  ;;  %v316_v43 = vld [vmem:[%s1675_s7 + $0x150] sm:$0xff]  ;;  %v317_v44 = vld [vmem:[%s1675_s7 + $0x158] sm:$0xff]  ;;  %v318_v45 = vld [vmem:[%s1675_s7 + $0x160] sm:$0xff] }
  0x4f   : > { %286 = vst [vmem:[#allocation2 + $0x68] sm:$0xff] %v254_v13  ;;  %v319_v46 = vld [vmem:[%s1675_s7 + $0x168] sm:$0xff]  ;;  %v320_v47 = vld [vmem:[%s1675_s7 + $0x170] sm:$0xff]  ;;  %v321_v48 = vld [vmem:[%s1675_s7 + $0x178] sm:$0xff] }
  0x50   : > { %287 = vst [vmem:[#allocation2 + $0x70] sm:$0xff] %v255_v14  ;;  %v322_v49 = vld [vmem:[%s1675_s7 + $0x180] sm:$0xff]  ;;  %v323_v50 = vld [vmem:[%s1675_s7 + $0x188] sm:$0xff]  ;;  %v324_v51 = vld [vmem:[%s1675_s7 + $0x190] sm:$0xff] }
  0x51   : > { %288 = vst [vmem:[#allocation2 + $0x78] sm:$0xff] %v256_v15  ;;  %v325_v52 = vld [vmem:[%s1675_s7 + $0x198] sm:$0xff]  ;;  %v326_v53 = vld [vmem:[%s1675_s7 + $0x1a0] sm:$0xff]  ;;  %v327_v54 = vld [vmem:[%s1675_s7 + $0x1a8] sm:$0xff] }
  0x52   : > { %289 = vst [vmem:[#allocation2 + $0x80] sm:$0xff] %v257_v16  ;;  %v328_v55 = vld [vmem:[%s1675_s7 + $0x1b0] sm:$0xff]  ;;  %v329_v56 = vld [vmem:[%s1675_s7 + $0x1b8] sm:$0xff]  ;;  %v330_v57 = vld [vmem:[%s1675_s7 + $0x1c0] sm:$0xff] }
  0x53   : > { %290 = vst [vmem:[#allocation2 + $0x88] sm:$0xff] %v258_v17  ;;  %v331_v58 = vld [vmem:[%s1675_s7 + $0x1c8] sm:$0xff]  ;;  %v332_v59 = vld [vmem:[%s1675_s7 + $0x1d0] sm:$0xff]  ;;  %v333_v60 = vld [vmem:[%s1675_s7 + $0x1d8] sm:$0xff] }
  0x54   : > { %291 = vst [vmem:[#allocation2 + $0x90] sm:$0xff] %v259_v18  ;;  %v334_v61 = vld [vmem:[%s1675_s7 + $0x1e0] sm:$0xff]  ;;  %v335_v62 = vld [vmem:[%s1675_s7 + $0x1e8] sm:$0xff]  ;;  %v336_v63 = vld [vmem:[%s1675_s7 + $0x1f0] sm:$0xff] }
  0x55   : > { %292 = vst [vmem:[#allocation2 + $0x98] sm:$0xff] %v260_v19  ;;  %v337_v0 = vld [vmem:[%s1675_s7 + $0x1f8] sm:$0xff] }
  0x56   : > { %293 = vst [vmem:[#allocation2 + $0xa0] sm:$0xff] %v261_v20 }
  0x57   : > { %294 = vst [vmem:[#allocation2 + $0xa8] sm:$0xff] %v262_v21 }
  0x58   : > { %295 = vst [vmem:[#allocation2 + $0xb0] sm:$0xff] %v263_v22 }
  0x59   : > { %296 = vst [vmem:[#allocation2 + $0xb8] sm:$0xff] %v264_v23 }
  0x5a   : > { %297 = vst [vmem:[#allocation2 + $0xc0] sm:$0xff] %v265_v24 }
  0x5b   : > { %298 = vst [vmem:[#allocation2 + $0xc8] sm:$0xff] %v266_v25 }
  0x5c   : > { %299 = vst [vmem:[#allocation2 + $0xd0] sm:$0xff] %v267_v26 }
  0x5d   : > { %300 = vst [vmem:[#allocation2 + $0xd8] sm:$0xff] %v268_v27 }
  0x5e   : > { %301 = vst [vmem:[#allocation2 + $0xe0] sm:$0xff] %v269_v28 }
  0x5f   : > { %302 = vst [vmem:[#allocation2 + $0xe8] sm:$0xff] %v270_v29 }
  0x60   : > { %303 = vst [vmem:[#allocation2 + $0xf0] sm:$0xff] %v271_v30 }
  0x61   : > { %304 = vst [vmem:[#allocation2 + $0xf8] sm:$0xff] %v272_v31 }
  0x62   : > { %305 = vst [vmem:[#allocation2 + $0x100] sm:$0xff] %v273_v32 }
  0x63   : > { %338 = vst [vmem:[#allocation2 + $0x108] sm:$0xff] %v306_v33 }
  0x64   : > { %339 = vst [vmem:[#allocation2 + $0x110] sm:$0xff] %v307_v34 }
  0x65   : > { %340 = vst [vmem:[#allocation2 + $0x118] sm:$0xff] %v308_v35 }
  0x66   : > { %341 = vst [vmem:[#allocation2 + $0x120] sm:$0xff] %v309_v36 }
  0x67   : > { %342 = vst [vmem:[#allocation2 + $0x128] sm:$0xff] %v310_v37 }
  0x68   : > { %343 = vst [vmem:[#allocation2 + $0x130] sm:$0xff] %v311_v38 }
  0x69   : > { %344 = vst [vmem:[#allocation2 + $0x138] sm:$0xff] %v312_v39 }
  0x6a   : > { %345 = vst [vmem:[#allocation2 + $0x140] sm:$0xff] %v313_v40 }
  0x6b   : > { %346 = vst [vmem:[#allocation2 + $0x148] sm:$0xff] %v314_v41 }
  0x6c   : > { %347 = vst [vmem:[#allocation2 + $0x150] sm:$0xff] %v315_v42 }
  0x6d   : > { %348 = vst [vmem:[#allocation2 + $0x158] sm:$0xff] %v316_v43 }
  0x6e   : > { %349 = vst [vmem:[#allocation2 + $0x160] sm:$0xff] %v317_v44 }
  0x6f   : > { %350 = vst [vmem:[#allocation2 + $0x168] sm:$0xff] %v318_v45 }
  0x70   : > { %351 = vst [vmem:[#allocation2 + $0x170] sm:$0xff] %v319_v46 }
  0x71   : > { %352 = vst [vmem:[#allocation2 + $0x178] sm:$0xff] %v320_v47 }
  0x72   : > { %353 = vst [vmem:[#allocation2 + $0x180] sm:$0xff] %v321_v48 }
  0x73   : > { %354 = vst [vmem:[#allocation2 + $0x188] sm:$0xff] %v322_v49 }
  0x74   : > { %355 = vst [vmem:[#allocation2 + $0x190] sm:$0xff] %v323_v50 }
  0x75   : > { %356 = vst [vmem:[#allocation2 + $0x198] sm:$0xff] %v324_v51 }
  0x76   : > { %357 = vst [vmem:[#allocation2 + $0x1a0] sm:$0xff] %v325_v52 }
  0x77   : > { %358 = vst [vmem:[#allocation2 + $0x1a8] sm:$0xff] %v326_v53 }
  0x78   : > { %359 = vst [vmem:[#allocation2 + $0x1b0] sm:$0xff] %v327_v54 }
  0x79   : > { %360 = vst [vmem:[#allocation2 + $0x1b8] sm:$0xff] %v328_v55 }
  0x7a   : > { %361 = vst [vmem:[#allocation2 + $0x1c0] sm:$0xff] %v329_v56 }
  0x7b   : > { %362 = vst [vmem:[#allocation2 + $0x1c8] sm:$0xff] %v330_v57 }
  0x7c   : > { %363 = vst [vmem:[#allocation2 + $0x1d0] sm:$0xff] %v331_v58 }
  0x7d   : > { %364 = vst [vmem:[#allocation2 + $0x1d8] sm:$0xff] %v332_v59 }
  0x7e   : > { %365 = vst [vmem:[#allocation2 + $0x1e0] sm:$0xff] %v333_v60 }
  0x7f   : > { %366 = vst [vmem:[#allocation2 + $0x1e8] sm:$0xff] %v334_v61 }
  0x80   : > { %367 = vst [vmem:[#allocation2 + $0x1f0] sm:$0xff] %v335_v62 }
  0x81   : > { %368 = vst [vmem:[#allocation2 + $0x1f8] sm:$0xff] %v336_v63 }
  0x82   : > { %369 = vst [vmem:[#allocation2 + $0x200] sm:$0xff] %v337_v0 }
  0x83 PF: > { %v1132_v1 = vld [vmem:[#allocation8 + $0x38] sm:$0xff]  ;;  %v1131_v2 = vld [vmem:[#allocation8 + $0x30] sm:$0xff]  ;;  %s987_s26 = sshll.u32 %s1487_s18, 8  ;;  %v1130_v3 = vld [vmem:[#allocation8 + $0x28] sm:$0xff]  ;;  %s1119_s24 = sshll.u32 %s1487_s18, 5 }
  0x84   : > { %718 = vmatpush.bf16.msra.mxu0 %v1132_v1  ;;  %1133 = vmatpush.bf16.msra.mxu1 %v1132_v1  ;;  %v372_v4 = vld [vmem:[#allocation6] sm:$0x7]  ;;  %v1129_v5 = vld [vmem:[#allocation8 + $0x20] sm:$0xff]  ;;  %s1758_s29 = scalar_lea.vmem [#allocation2], %s987_s26  ;;  %v1127_v46 = vld [vmem:[#allocation8 + $0x10] sm:$0xff]  ;;  %s1120_s15 = sshll.u32 %s1491_s19, 6 }
  0x85   : > { %1134 = vmatpush.bf16.msra.mxu2 %v1132_v1  ;;  %1135 = vmatpush.bf16.msra.mxu3 %v1132_v1  ;;  %v1756_v6 = vperm.slane %v372_v4, 0  ;;  %v1763_v10 = vperm.slane %v372_v4, 1  ;;  %v1767_v13 = vperm.slane %v372_v4, 2  ;;  %v1128_v15 = vld [vmem:[#allocation8 + $0x18] sm:$0xff]  ;;  %v1126_v0 = vld [vmem:[#allocation8 + $0x8] sm:$0xff]  ;;  %s851_s27 = sadd.s32 %s1120_s15, %s1119_s24  ;;  %s854_s9 = sshll.u32 %s1688_s8, 4  ;;  %s855_s9 = int_to_ptr.vmem [resolvable:$true] %s854_s9 }
  0x86   : > { %s1121_s23 = sshll.u32 %s851_s27, 3  ;;  %s840_s28 = scalar_lea.sflag [#allocation5], %s233_s12 }
  0x87   : > { %s853_s6 = scalar_lea.hbm %s2046_s3, %s1121_s23  ;;  %s1397_s7 = scalar_lea.hbm %s2046_s3, 1024 }
  0x88   : > { %719 = vmatpush.bf16.msra.mxu0 %v1131_v2  ;;  %1136 = vmatpush.bf16.msra.mxu1 %v1131_v2  ;;  %s856_s1 = sshll.u32 %s853_s6, 4  ;;  %s857_s1 = int_to_ptr.hbm [resolvable:$true] %s856_s1 }
  0x89   : > { %1137 = vmatpush.bf16.msra.mxu2 %v1131_v2  ;;  %1138 = vmatpush.bf16.msra.mxu3 %v1131_v2  ;;  %v988_v7 = vld [vmem:[%s1758_s29 + $0x7] sm:$0xff]  ;;  %v989_v8 = vld [vmem:[%s1758_s29 + $0xf] sm:$0xff]  ;;  %s1391_s5 = sshra.s32 %s857_s1, 4  ;;  %s1392_s5 = int_to_ptr.hbm [resolvable:$true] %s1391_s5 }
  0x8a   : > { %v1021_v9 = vld [vmem:[%s1758_s29 + $0x8] sm:$0xff]  ;;  %v1022_v11 = vld [vmem:[%s1758_s29 + $0x10] sm:$0xff]  ;;  %v408_v19 = vmul.f32 %v988_v7, %v1756_v6  ;;  %v409_v23 = vmul.f32 %v989_v8, %v1756_v6  ;;  %s1393_s10 = scalar_lea.hbm %s1392_s5, 256  ;;  %p1398_p1 = scmp.lt.s32.totalorder %s1392_s5, %s2046_s3 }
  0x8b   : > { %v1054_v12 = vld [vmem:[%s1758_s29 + $0x9] sm:$0xff]  ;;  %v475_v24 = vmul.f32 %v1021_v9, %v1763_v10  ;;  %v476_v25 = vmul.f32 %v1022_v11, %v1763_v10  ;;  %v1055_v29 = vld [vmem:[%s1758_s29 + $0x11] sm:$0xff]  ;;  %p1394_p3 = scmp.ne.s32.totalorder %s1392_s5, %s1393_s10  ;;  %p1399_p2 = scmp.lt.s32.totalorder %s1397_s7, %s1393_s10 }
  0x8c   : > { %720 = vmatpush.bf16.msra.mxu0 %v1130_v3  ;;  %1139 = vmatpush.bf16.msra.mxu1 %v1130_v3  ;;  %v996_v14 = vld [vmem:[%s1758_s29 + $0x47] sm:$0xff]  ;;  %v997_v16 = vld [vmem:[%s1758_s29 + $0x4f] sm:$0xff]  ;;  %v574_v30 = vmul.f32 %v1054_v12, %v1767_v13  ;;  %v575_v47 = vmul.f32 %v1055_v29, %v1767_v13  ;;  %v1007_v29 = vld [vmem:[%s1758_s29 + $0x9f] sm:$0xff] }
  0x8d   : > { %1140 = vmatpush.bf16.msra.mxu2 %v1130_v3  ;;  %1141 = vmatpush.bf16.msra.mxu3 %v1130_v3  ;;  %v1029_v17 = vld [vmem:[%s1758_s29 + $0x48] sm:$0xff]  ;;  %v1030_v18 = vld [vmem:[%s1758_s29 + $0x50] sm:$0xff]  ;;  %v416_v31 = vmul.f32 %v996_v14, %v1756_v6  ;;  %v417_v32 = vmul.f32 %v997_v16, %v1756_v6  ;;  %v507_v51 = vadd.f32 %v475_v24, %v408_v19  ;;  %v1024_v19 = vld [vmem:[%s1758_s29 + $0x20] sm:$0xff]  ;;  %p1395_p6 = pnand %p1394_p3, %p1613_p10  ;;  %p1400_p5 = por %p1399_p2, %p1398_p1 }
  0x8e   : > { %v1004_v20 = vld [vmem:[%s1758_s29 + $0x87] sm:$0xff]  ;;  %v1005_v21 = vld [vmem:[%s1758_s29 + $0x8f] sm:$0xff]  ;;  %v483_v35 = vmul.f32 %v1029_v17, %v1763_v10  ;;  %v484_v36 = vmul.f32 %v1030_v18, %v1763_v10  ;;  %v508_v52 = vadd.f32 %v476_v25, %v409_v23  ;;  %v990_v16 = vld [vmem:[%s1758_s29 + $0x17] sm:$0xff] }
  0x8f   : > { %v1037_v22 = vld [vmem:[%s1758_s29 + $0x88] sm:$0xff]  ;;  %v1038_v26 = vld [vmem:[%s1758_s29 + $0x90] sm:$0xff]  ;;  %v424_v38 = vmul.f32 %v1004_v20, %v1756_v6  ;;  %v425_v39 = vmul.f32 %v1005_v21, %v1756_v6  ;;  %v606_v4 = vadd.f32 %v574_v30, %v507_v51  ;;  %v991_v17 = vld [vmem:[%s1758_s29 + $0x1f] sm:$0xff]  ;;  %v410_v25 = vmul.f32 %v990_v16, %v1756_v6  ;;  %p1396_p0 = pneg %p1395_p6 }
  0x90   : > { %721 = vmatpush.bf16.msra.mxu0 %v1129_v5  ;;  %1142 = vmatpush.bf16.msra.mxu1 %v1129_v5  ;;  %v1012_v27 = vld [vmem:[%s1758_s29 + $0xc7] sm:$0xff]  ;;  %v1013_v33 = vld [vmem:[%s1758_s29 + $0xcf] sm:$0xff]  ;;  %v491_v41 = vmul.f32 %v1037_v22, %v1763_v10  ;;  %v492_v42 = vmul.f32 %v1038_v26, %v1763_v10  ;;  %v515_v56 = vadd.f32 %v483_v35, %v416_v31  ;;  %v1023_v18 = vld [vmem:[%s1758_s29 + $0x18] sm:$0xff] }
  0x91   : > { %v1045_v28 = vld [vmem:[%s1758_s29 + $0xc8] sm:$0xff]  ;;  %1143 = vmatpush.bf16.msra.mxu2 %v1129_v5  ;;  %1144 = vmatpush.bf16.msra.mxu3 %v1129_v5  ;;  %v1046_v34 = vld [vmem:[%s1758_s29 + $0xd0] sm:$0xff]  ;;  %v432_v44 = vmul.f32 %v1012_v27, %v1756_v6  ;;  %v433_v49 = vmul.f32 %v1013_v33, %v1756_v6  ;;  %v516_v57 = vadd.f32 %v484_v36, %v417_v32  ;;  %v999_v21 = vld [vmem:[%s1758_s29 + $0x5f] sm:$0xff]  ;;  %p1401_p7 = pnand %p1400_p5, %p1396_p0 }
  0x92   : > { %v1062_v37 = vld [vmem:[%s1758_s29 + $0x49] sm:$0xff]  ;;  %v1063_v40 = vld [vmem:[%s1758_s29 + $0x51] sm:$0xff]  ;;  %v499_v45 = vmul.f32 %v1045_v28, %v1763_v10  ;;  %v500_v50 = vmul.f32 %v1046_v34, %v1763_v10  ;;  %v523_v60 = vadd.f32 %v491_v41, %v424_v38  ;;  %v524_v61 = vadd.f32 %v492_v42, %v425_v39  ;;  %v1032_v27 = vld [vmem:[%s1758_s29 + $0x60] sm:$0xff] }
  0x93   : > { %v1070_v43 = vld [vmem:[%s1758_s29 + $0x89] sm:$0xff]  ;;  %v1071_v48 = vld [vmem:[%s1758_s29 + $0x91] sm:$0xff]  ;;  %v582_v53 = vmul.f32 %v1062_v37, %v1767_v13  ;;  %v583_v58 = vmul.f32 %v1063_v40, %v1767_v13  ;;  %v607_v5 = vadd.f32 %v575_v47, %v508_v52  ;;  %v411_v26 = vmul.f32 %v991_v17, %v1756_v6  ;;  %v1040_v34 = vld [vmem:[%s1758_s29 + $0xa0] sm:$0xff] }
  0x94   : > { %722 = vmatpush.bf16.msra.mxu0 %v1128_v15  ;;  %1145 = vmatpush.bf16.msra.mxu1 %v1128_v15  ;;  %v1078_v54 = vld [vmem:[%s1758_s29 + $0xc9] sm:$0xff]  ;;  %v1079_v55 = vld [vmem:[%s1758_s29 + $0xd1] sm:$0xff]  ;;  %v590_v59 = vmul.f32 %v1070_v43, %v1767_v13  ;;  %v591_v62 = vmul.f32 %v1071_v48, %v1767_v13  ;;  %v531_v63 = vadd.f32 %v499_v45, %v432_v44  ;;  %v1015_v39 = vld [vmem:[%s1758_s29 + $0xdf] sm:$0xff] }
  0x95   : > { %1146 = vmatpush.bf16.msra.mxu2 %v1128_v15  ;;  %1147 = vmatpush.bf16.msra.mxu3 %v1128_v15  ;;  %v532_v1 = vadd.f32 %v500_v50, %v433_v49  ;;  %v598_v2 = vmul.f32 %v1078_v54, %v1767_v13  ;;  %v599_v3 = vmul.f32 %v1079_v55, %v1767_v13  ;;  %v1125_v11 = vld [vmem:[#allocation8] sm:$0xff]  ;;  %v1048_v41 = vld [vmem:[%s1758_s29 + $0xe0] sm:$0xff] }
  0x96   : > { %v614_v7 = vadd.f32 %v582_v53, %v515_v56  ;;  %v615_v8 = vadd.f32 %v583_v58, %v516_v57  ;;  %v622_v9 = vadd.f32 %v590_v59, %v523_v60  ;;  %v623_v12 = vadd.f32 %v591_v62, %v524_v61  ;;  %v998_v20 = vld [vmem:[%s1758_s29 + $0x57] sm:$0xff]  ;;  %v1057_v43 = vld [vmem:[%s1758_s29 + $0x21] sm:$0xff] }
  0x97   : > { %v630_v14 = vadd.f32 %v598_v2, %v531_v63  ;;  %v631_v15 = vadd.f32 %v599_v3, %v532_v1  ;;  %v1031_v22 = vld [vmem:[%s1758_s29 + $0x58] sm:$0xff]  ;;  %v638_v23 = vpack.c.bf16 %v607_v5, %v606_v4  ;;  %v477_v32 = vmul.f32 %v1023_v18, %v1763_v10  ;;  %v1065_v49 = vld [vmem:[%s1758_s29 + $0x61] sm:$0xff] }
  0x98   : > { %723 = vmatpush.bf16.msra.mxu0 %v1127_v46  ;;  %1148 = vmatpush.bf16.msra.mxu1 %v1127_v46  ;;  %v642_v24 = vpack.c.bf16 %v615_v8, %v614_v7  ;;  %v1006_v28 = vld [vmem:[%s1758_s29 + $0x97] sm:$0xff]  ;;  %v646_v30 = vpack.c.bf16 %v623_v12, %v622_v9  ;;  %v478_v36 = vmul.f32 %v1024_v19, %v1763_v10  ;;  %v1073_v54 = vld [vmem:[%s1758_s29 + $0xa1] sm:$0xff] }
  0x99   : > { %1149 = vmatpush.bf16.msra.mxu2 %v1127_v46  ;;  %1150 = vmatpush.bf16.msra.mxu3 %v1127_v46  ;;  %v650_v31 = vpack.c.bf16 %v631_v15, %v630_v14  ;;  %v1039_v33 = vld [vmem:[%s1758_s29 + $0x98] sm:$0xff]  ;;  %v418_v37 = vmul.f32 %v998_v20, %v1756_v6  ;;  %v419_v38 = vmul.f32 %v999_v21, %v1756_v6  ;;  %v1081_v63 = vld [vmem:[%s1758_s29 + $0xe1] sm:$0xff] }
  0x9a   : > { %v1014_v35 = vld [vmem:[%s1758_s29 + $0xd7] sm:$0xff]  ;;  %v485_v44 = vmul.f32 %v1031_v22, %v1763_v10  ;;  %v486_v45 = vmul.f32 %v1032_v27, %v1763_v10  ;;  %v426_v46 = vmul.f32 %v1006_v28, %v1756_v6  ;;  %v427_v47 = vmul.f32 %v1007_v29, %v1756_v6  ;;  %v1000_v27 = vld [vmem:[%s1758_s29 + $0x67] sm:$0xff]  ;;  %v1001_v28 = vld [vmem:[%s1758_s29 + $0x6f] sm:$0xff] }
  0x9b   : > { %v1047_v40 = vld [vmem:[%s1758_s29 + $0xd8] sm:$0xff]  ;;  %v493_v50 = vmul.f32 %v1039_v33, %v1763_v10  ;;  %v494_v51 = vmul.f32 %v1040_v34, %v1763_v10  ;;  %v434_v52 = vmul.f32 %v1014_v35, %v1756_v6  ;;  %v435_v55 = vmul.f32 %v1015_v39, %v1756_v6  ;;  %v1033_v29 = vld [vmem:[%s1758_s29 + $0x68] sm:$0xff] }
  0x9c   : > { %724 = vmatpush.bf16.msra.mxu0 %v1126_v0  ;;  %1151 = vmatpush.bf16.msra.mxu1 %v1126_v0  ;;  %v1056_v42 = vld [vmem:[%s1758_s29 + $0x19] sm:$0xff]  ;;  %v501_v56 = vmul.f32 %v1047_v40, %v1763_v10  ;;  %v502_v57 = vmul.f32 %v1048_v41, %v1763_v10  ;;  %v509_v58 = vadd.f32 %v477_v32, %v410_v25  ;;  %v1025_v25 = vld [vmem:[%s1758_s29 + $0x28] sm:$0xff]  ;;  %v1034_v32 = vld [vmem:[%s1758_s29 + $0x70] sm:$0xff] }
  0x9d   : > { %1152 = vmatpush.bf16.msra.mxu2 %v1126_v0  ;;  %1153 = vmatpush.bf16.msra.mxu3 %v1126_v0  ;;  %v1064_v48 = vld [vmem:[%s1758_s29 + $0x59] sm:$0xff]  ;;  %v510_v59 = vadd.f32 %v478_v36, %v411_v26  ;;  %v576_v60 = vmul.f32 %v1056_v42, %v1767_v13  ;;  %v577_v61 = vmul.f32 %v1057_v43, %v1767_v13  ;;  %v1026_v26 = vld [vmem:[%s1758_s29 + $0x30] sm:$0xff]  ;;  %v1008_v33 = vld [vmem:[%s1758_s29 + $0xa7] sm:$0xff] }
  0x9e   : > { %v1072_v53 = vld [vmem:[%s1758_s29 + $0x99] sm:$0xff]  ;;  %v517_v0 = vadd.f32 %v485_v44, %v418_v37  ;;  %v518_v1 = vadd.f32 %v486_v45, %v419_v38  ;;  %v584_v2 = vmul.f32 %v1064_v48, %v1767_v13  ;;  %v585_v3 = vmul.f32 %v1065_v49, %v1767_v13  ;;  %v1009_v34 = vld [vmem:[%s1758_s29 + $0xaf] sm:$0xff]  ;;  %v1016_v41 = vld [vmem:[%s1758_s29 + $0xe7] sm:$0xff] }
  0x9f   : > { %v1080_v62 = vld [vmem:[%s1758_s29 + $0xd9] sm:$0xff]  ;;  %v525_v4 = vadd.f32 %v493_v50, %v426_v46  ;;  %v526_v5 = vadd.f32 %v494_v51, %v427_v47  ;;  %v592_v7 = vmul.f32 %v1072_v53, %v1767_v13  ;;  %v593_v8 = vmul.f32 %v1073_v54, %v1767_v13  ;;  %v1041_v39 = vld [vmem:[%s1758_s29 + $0xa8] sm:$0xff]  ;;  %v1042_v40 = vld [vmem:[%s1758_s29 + $0xb0] sm:$0xff] }
  0xa0   : > { %725 = vmatpush.bf16.msra.mxu0 %v1125_v11  ;;  %1154 = vmatpush.bf16.msra.mxu1 %v1125_v11  ;;  %v533_v9 = vadd.f32 %v501_v56, %v434_v52  ;;  %v600_v12 = vmul.f32 %v1080_v62, %v1767_v13  ;;  %v601_v14 = vmul.f32 %v1081_v63, %v1767_v13  ;;  %v1017_v46 = vld [vmem:[%s1758_s29 + $0xef] sm:$0xff] }
  0xa1   : > { %1155 = vmatpush.bf16.msra.mxu2 %v1125_v11  ;;  %1156 = vmatpush.bf16.msra.mxu3 %v1125_v11  ;;  %v534_v11 = vadd.f32 %v502_v57, %v435_v55  ;;  %v608_v15 = vadd.f32 %v576_v60, %v509_v58  ;;  %v609_v16 = vadd.f32 %v577_v61, %v510_v59  ;;  %v1049_v47 = vld [vmem:[%s1758_s29 + $0xe8] sm:$0xff]  ;;  %v1050_v48 = vld [vmem:[%s1758_s29 + $0xf0] sm:$0xff] }
  0xa2   : > { %v616_v17 = vadd.f32 %v584_v2, %v517_v0  ;;  %v617_v18 = vadd.f32 %v585_v3, %v518_v1  ;;  %v624_v19 = vadd.f32 %v592_v7, %v525_v4  ;;  %v625_v20 = vadd.f32 %v593_v8, %v526_v5  ;;  %v1058_v49 = vld [vmem:[%s1758_s29 + $0x29] sm:$0xff]  ;;  %v1059_v50 = vld [vmem:[%s1758_s29 + $0x31] sm:$0xff] }
  0xa3   : > { %726 = vmatmul.bf16.vlgmr.msra.gmra.mxu0 %v638_v23  ;;  %746 = vmatmul.bf16.vlgmr.msra.gmra.mxu1 %v642_v24  ;;  %v632_v21 = vadd.f32 %v600_v12, %v533_v9  ;;  %v633_v22 = vadd.f32 %v601_v14, %v534_v11  ;;  %v992_v23 = vld [vmem:[%s1758_s29 + $0x27] sm:$0xff]  ;;  %v993_v24 = vld [vmem:[%s1758_s29 + $0x2f] sm:$0xff]  ;;  %v479_v42 = vmul.f32 %v1025_v25, %v1763_v10 }
  0xa4   : > { %766 = vmatmul.bf16.vlgmr.msra.gmra.mxu2 %v646_v30  ;;  %786 = vmatmul.bf16.vlgmr.msra.gmra.mxu3 %v650_v31  ;;  %v639_v30 = vpack.c.bf16 %v609_v16, %v608_v15  ;;  %v643_v31 = vpack.c.bf16 %v617_v18, %v616_v17  ;;  %v647_v35 = vpack.c.bf16 %v625_v20, %v624_v19  ;;  %v1066_v55 = vld [vmem:[%s1758_s29 + $0x69] sm:$0xff]  ;;  %v1067_v56 = vld [vmem:[%s1758_s29 + $0x71] sm:$0xff] }
  0xa5   : > { %v651_v36 = vpack.c.bf16 %v633_v22, %v632_v21  ;;  %v412_v37 = vmul.f32 %v992_v23, %v1756_v6  ;;  %v413_v38 = vmul.f32 %v993_v24, %v1756_v6  ;;  %v480_v43 = vmul.f32 %v1026_v26, %v1763_v10  ;;  %v1074_v60 = vld [vmem:[%s1758_s29 + $0xa9] sm:$0xff]  ;;  %v1075_v61 = vld [vmem:[%s1758_s29 + $0xb1] sm:$0xff] }
  0xa6   : > { %v420_v44 = vmul.f32 %v1000_v27, %v1756_v6  ;;  %v421_v45 = vmul.f32 %v1001_v28, %v1756_v6  ;;  %v487_v51 = vmul.f32 %v1033_v29, %v1763_v10  ;;  %v488_v52 = vmul.f32 %v1034_v32, %v1763_v10  ;;  %v1082_v5 = vld [vmem:[%s1758_s29 + $0xe9] sm:$0xff]  ;;  %v1083_v7 = vld [vmem:[%s1758_s29 + $0xf1] sm:$0xff] }
  0xa7   : > { %v428_v53 = vmul.f32 %v1008_v33, %v1756_v6  ;;  %v429_v54 = vmul.f32 %v1009_v34, %v1756_v6  ;;  %v495_v57 = vmul.f32 %v1041_v39, %v1763_v10  ;;  %v496_v58 = vmul.f32 %v1042_v40, %v1763_v10  ;;  %v1027_v32 = vld [vmem:[%s1758_s29 + $0x38] sm:$0xff]  ;;  %v1028_v33 = vld [vmem:[%s1758_s29 + $0x40] sm:$0xff] }
  0xa8   : > { %v436_v59 = vmul.f32 %v1016_v41, %v1756_v6  ;;  %v437_v62 = vmul.f32 %v1017_v46, %v1756_v6  ;;  %v503_v63 = vmul.f32 %v1049_v47, %v1763_v10  ;;  %v504_v0 = vmul.f32 %v1050_v48, %v1763_v10  ;;  %v1002_v34 = vld [vmem:[%s1758_s29 + $0x77] sm:$0xff]  ;;  %v1036_v39 = vld [vmem:[%s1758_s29 + $0x80] sm:$0xff] }
  0xa9   : > { %v511_v1 = vadd.f32 %v479_v42, %v412_v37  ;;  %v512_v2 = vadd.f32 %v480_v43, %v413_v38  ;;  %v578_v3 = vmul.f32 %v1058_v49, %v1767_v13  ;;  %v579_v4 = vmul.f32 %v1059_v50, %v1767_v13  ;;  %v1010_v40 = vld [vmem:[%s1758_s29 + $0xb7] sm:$0xff]  ;;  %v1011_v41 = vld [vmem:[%s1758_s29 + $0xbf] sm:$0xff] }
  0xaa   : > { %v519_v8 = vadd.f32 %v487_v51, %v420_v44  ;;  %v520_v9 = vadd.f32 %v488_v52, %v421_v45  ;;  %v586_v11 = vmul.f32 %v1066_v55, %v1767_v13  ;;  %v587_v12 = vmul.f32 %v1067_v56, %v1767_v13  ;;  %v1043_v46 = vld [vmem:[%s1758_s29 + $0xb8] sm:$0xff]  ;;  %v1044_v47 = vld [vmem:[%s1758_s29 + $0xc0] sm:$0xff] }
  0xab   : > { %v527_v14 = vadd.f32 %v495_v57, %v428_v53  ;;  %v528_v15 = vadd.f32 %v496_v58, %v429_v54  ;;  %v594_v16 = vmul.f32 %v1074_v60, %v1767_v13  ;;  %v595_v17 = vmul.f32 %v1075_v61, %v1767_v13  ;;  %v1018_v48 = vld [vmem:[%s1758_s29 + $0xf7] sm:$0xff]  ;;  %v1019_v53 = vld [vmem:[%s1758_s29 + $0xff] sm:$0xff] }
  0xac   : > { %v535_v18 = vadd.f32 %v503_v63, %v436_v59  ;;  %v536_v19 = vadd.f32 %v504_v0, %v437_v62  ;;  %v602_v20 = vmul.f32 %v1082_v5, %v1767_v13  ;;  %v603_v21 = vmul.f32 %v1083_v7, %v1767_v13  ;;  %v1051_v54 = vld [vmem:[%s1758_s29 + $0xf8] sm:$0xff]  ;;  %v1052_v55 = vld [vmem:[%s1758_s29 + $0x100] sm:$0xff] }
  0xad   : > { %v610_v22 = vadd.f32 %v578_v3, %v511_v1  ;;  %v611_v23 = vadd.f32 %v579_v4, %v512_v2  ;;  %v618_v24 = vadd.f32 %v586_v11, %v519_v8  ;;  %v619_v25 = vadd.f32 %v587_v12, %v520_v9  ;;  %v1060_v56 = vld [vmem:[%s1758_s29 + $0x39] sm:$0xff]  ;;  %v1061_v57 = vld [vmem:[%s1758_s29 + $0x41] sm:$0xff] }
  0xae   : > { %v626_v26 = vadd.f32 %v594_v16, %v527_v14  ;;  %v627_v27 = vadd.f32 %v595_v17, %v528_v15  ;;  %v634_v28 = vadd.f32 %v602_v20, %v535_v18  ;;  %v635_v29 = vadd.f32 %v603_v21, %v536_v19  ;;  %v1068_v62 = vld [vmem:[%s1758_s29 + $0x79] sm:$0xff]  ;;  %v1069_v63 = vld [vmem:[%s1758_s29 + $0x81] sm:$0xff] }
  0xaf   : > { %v640_v37 = vpack.c.bf16 %v611_v23, %v610_v22  ;;  %v644_v38 = vpack.c.bf16 %v619_v25, %v618_v24  ;;  %v481_v49 = vmul.f32 %v1027_v32, %v1763_v10  ;;  %v482_v50 = vmul.f32 %v1028_v33, %v1763_v10  ;;  %v1076_v3 = vld [vmem:[%s1758_s29 + $0xb9] sm:$0xff]  ;;  %v1077_v4 = vld [vmem:[%s1758_s29 + $0xc1] sm:$0xff] }
  0xb0   : > { %v648_v42 = vpack.c.bf16 %v627_v27, %v626_v26  ;;  %v652_v43 = vpack.c.bf16 %v635_v29, %v634_v28  ;;  %v422_v51 = vmul.f32 %v1002_v34, %v1756_v6  ;;  %v490_v59 = vmul.f32 %v1036_v39, %v1763_v10  ;;  %v1084_v15 = vld [vmem:[%s1758_s29 + $0xf9] sm:$0xff]  ;;  %v1085_v16 = vld [vmem:[%s1758_s29 + $0x101] sm:$0xff] }
  0xb1   : > { %v430_v60 = vmul.f32 %v1010_v40, %v1756_v6  ;;  %v431_v61 = vmul.f32 %v1011_v41, %v1756_v6  ;;  %v497_v0 = vmul.f32 %v1043_v46, %v1763_v10  ;;  %v498_v1 = vmul.f32 %v1044_v47, %v1763_v10 }
  0xb2   : > { %v438_v2 = vmul.f32 %v1018_v48, %v1756_v6  ;;  %v439_v5 = vmul.f32 %v1019_v53, %v1756_v6  ;;  %v505_v7 = vmul.f32 %v1051_v54, %v1763_v10  ;;  %v506_v8 = vmul.f32 %v1052_v55, %v1763_v10 }
  0xb3   : > { %731 = vmatmul.bf16.gmra.mxu0 %v639_v30  ;;  %751 = vmatmul.bf16.gmra.mxu1 %v643_v31  ;;  %v994_v30 = vld [vmem:[%s1758_s29 + $0x37] sm:$0xff]  ;;  %v995_v31 = vld [vmem:[%s1758_s29 + $0x3f] sm:$0xff]  ;;  %v580_v12 = vmul.f32 %v1060_v56, %v1767_v13  ;;  %v581_v14 = vmul.f32 %v1061_v57, %v1767_v13  ;;  %v588_v19 = vmul.f32 %v1068_v62, %v1767_v13 }
  0xb4   : > { %771 = vmatmul.bf16.gmra.mxu2 %v647_v35  ;;  %791 = vmatmul.bf16.gmra.mxu3 %v651_v36  ;;  %v1003_v35 = vld [vmem:[%s1758_s29 + $0x7f] sm:$0xff]  ;;  %v414_v44 = vmul.f32 %v994_v30, %v1756_v6  ;;  %v415_v45 = vmul.f32 %v995_v31, %v1756_v6  ;;  %v589_v20 = vmul.f32 %v1069_v63, %v1767_v13 }
  0xb5   : > { %v1035_v36 = vld [vmem:[%s1758_s29 + $0x78] sm:$0xff]  ;;  %v423_v52 = vmul.f32 %v1003_v35, %v1756_v6  ;;  %v529_v21 = vadd.f32 %v497_v0, %v430_v60  ;;  %v530_v6 = vadd.f32 %v498_v1, %v431_v61  ;;  %v596_v22 = vmul.f32 %v1076_v3, %v1767_v13 }
  0xb6   : > { %v489_v58 = vmul.f32 %v1035_v36, %v1763_v10  ;;  %v513_v9 = vadd.f32 %v481_v49, %v414_v44  ;;  %v514_v11 = vadd.f32 %v482_v50, %v415_v45  ;;  %v597_v10 = vmul.f32 %v1077_v4, %v1767_v13 }
  0xb7   : > { %v522_v18 = vadd.f32 %v490_v59, %v423_v52  ;;  %v537_v23 = vadd.f32 %v505_v7, %v438_v2  ;;  %v538_v24 = vadd.f32 %v506_v8, %v439_v5  ;;  %v604_v25 = vmul.f32 %v1084_v15, %v1767_v13 }
  0xb8   : > { %v521_v17 = vadd.f32 %v489_v58, %v422_v51  ;;  %v605_v26 = vmul.f32 %v1085_v16, %v1767_v13  ;;  %v612_v27 = vadd.f32 %v580_v12, %v513_v9  ;;  %v613_v28 = vadd.f32 %v581_v14, %v514_v11 }
  0xb9   : > { %v621_v30 = vadd.f32 %v589_v20, %v522_v18  ;;  %v628_v31 = vadd.f32 %v596_v22, %v529_v21  ;;  %v629_v32 = vadd.f32 %v597_v10, %v530_v6  ;;  %v636_v33 = vadd.f32 %v604_v25, %v537_v23 }
  0xba   : > { %v620_v29 = vadd.f32 %v588_v19, %v521_v17  ;;  %v637_v34 = vadd.f32 %v605_v26, %v538_v24  ;;  %v641_v35 = vpack.c.bf16 %v613_v28, %v612_v27 }
  0xbc   : > { %v645_v36 = vpack.c.bf16 %v621_v30, %v620_v29 }
  0xc3   : > { %736 = vmatmul.bf16.gmra.mxu0 %v640_v37  ;;  %756 = vmatmul.bf16.gmra.mxu1 %v644_v38  ;;  %v649_v37 = vpack.c.bf16 %v629_v32, %v628_v31  ;;  %v653_v38 = vpack.c.bf16 %v637_v34, %v636_v33 }
  0xc4   : > { %776 = vmatmul.bf16.gmra.mxu2 %v648_v42  ;;  %796 = vmatmul.bf16.gmra.mxu3 %v652_v43 }
  0xd3   : > { %741 = vmatmul.bf16.gmra.mxu0 %v641_v35  ;;  %761 = vmatmul.bf16.gmra.mxu1 %v645_v36 }
  0xd4   : > { %781 = vmatmul.bf16.gmra.mxu2 %v649_v37  ;;  %801 = vmatmul.bf16.gmra.mxu3 %v653_v38 }
 0x120   : > { %v727_v13 = vpop.f32.mrf.mxu0  ;;  %v747_v39 = vpop.f32.mrf.mxu1 }
 0x121   : > { %807 = vst [vmem:[%s1688_s8] sm:$0xff] %v727_v13 }
 0x122   : > { %815 = vst [vmem:[%s1688_s8 + $0x40] sm:$0xff] %v747_v39 }
 0x127   : > { %v767_v40 = vpop.f32.mrf.mxu2  ;;  %v787_v41 = vpop.f32.mrf.mxu3 }
 0x128   : > { %823 = vst [vmem:[%s1688_s8 + $0x80] sm:$0xff] %v767_v40  ;;  %v729_v42 = vpop.f32.mrf.mxu0  ;;  %v749_v43 = vpop.f32.mrf.mxu1 }
 0x129   : > { %831 = vst [vmem:[%s1688_s8 + $0xc0] sm:$0xff] %v787_v41 }
 0x12a   : > { %808 = vst [vmem:[%s1688_s8 + $0x8] sm:$0xff] %v729_v42 }
 0x12b   : > { %816 = vst [vmem:[%s1688_s8 + $0x48] sm:$0xff] %v749_v43 }
 0x12f   : > { %v769_v44 = vpop.f32.mrf.mxu2  ;;  %v789_v45 = vpop.f32.mrf.mxu3 }
 0x130   : > { %824 = vst [vmem:[%s1688_s8 + $0x88] sm:$0xff] %v769_v44  ;;  %v732_v46 = vpop.f32.mrf.mxu0  ;;  %v752_v47 = vpop.f32.mrf.mxu1 }
 0x131   : > { %832 = vst [vmem:[%s1688_s8 + $0xc8] sm:$0xff] %v789_v45 }
 0x132   : > { %809 = vst [vmem:[%s1688_s8 + $0x10] sm:$0xff] %v732_v46 }
 0x133   : > { %817 = vst [vmem:[%s1688_s8 + $0x50] sm:$0xff] %v752_v47 }
 0x137   : > { %v772_v48 = vpop.f32.mrf.mxu2  ;;  %v792_v49 = vpop.f32.mrf.mxu3 }
 0x138   : > { %825 = vst [vmem:[%s1688_s8 + $0x90] sm:$0xff] %v772_v48  ;;  %v734_v50 = vpop.f32.mrf.mxu0  ;;  %v754_v51 = vpop.f32.mrf.mxu1 }
 0x139   : > { %833 = vst [vmem:[%s1688_s8 + $0xd0] sm:$0xff] %v792_v49 }
 0x13a   : > { %810 = vst [vmem:[%s1688_s8 + $0x18] sm:$0xff] %v734_v50 }
 0x13b   : > { %818 = vst [vmem:[%s1688_s8 + $0x58] sm:$0xff] %v754_v51 }
 0x13f   : > { %v774_v52 = vpop.f32.mrf.mxu2  ;;  %v794_v53 = vpop.f32.mrf.mxu3 }
 0x140   : > { %826 = vst [vmem:[%s1688_s8 + $0x98] sm:$0xff] %v774_v52  ;;  %v737_v54 = vpop.f32.mrf.mxu0  ;;  %v757_v55 = vpop.f32.mrf.mxu1 }
 0x141   : > { %834 = vst [vmem:[%s1688_s8 + $0xd8] sm:$0xff] %v794_v53 }
 0x142   : > { %811 = vst [vmem:[%s1688_s8 + $0x20] sm:$0xff] %v737_v54 }
 0x143   : > { %819 = vst [vmem:[%s1688_s8 + $0x60] sm:$0xff] %v757_v55 }
 0x147   : > { %v777_v56 = vpop.f32.mrf.mxu2  ;;  %v797_v57 = vpop.f32.mrf.mxu3 }
 0x148   : > { %827 = vst [vmem:[%s1688_s8 + $0xa0] sm:$0xff] %v777_v56  ;;  %v739_v58 = vpop.f32.mrf.mxu0  ;;  %v759_v59 = vpop.f32.mrf.mxu1 }
 0x149   : > { %835 = vst [vmem:[%s1688_s8 + $0xe0] sm:$0xff] %v797_v57 }
 0x14a   : > { %812 = vst [vmem:[%s1688_s8 + $0x28] sm:$0xff] %v739_v58 }
 0x14b   : > { %820 = vst [vmem:[%s1688_s8 + $0x68] sm:$0xff] %v759_v59 }
 0x14f   : > { %v779_v60 = vpop.f32.mrf.mxu2  ;;  %v799_v61 = vpop.f32.mrf.mxu3 }
 0x150   : > { %828 = vst [vmem:[%s1688_s8 + $0xa8] sm:$0xff] %v779_v60  ;;  %v742_v62 = vpop.f32.mrf.mxu0  ;;  %v762_v63 = vpop.f32.mrf.mxu1 }
 0x151   : > { %836 = vst [vmem:[%s1688_s8 + $0xe8] sm:$0xff] %v799_v61 }
 0x152   : > { %813 = vst [vmem:[%s1688_s8 + $0x30] sm:$0xff] %v742_v62 }
 0x153   : > { %821 = vst [vmem:[%s1688_s8 + $0x70] sm:$0xff] %v762_v63 }
 0x157   : > { %v782_v0 = vpop.f32.mrf.mxu2  ;;  %v802_v1 = vpop.f32.mrf.mxu3 }
 0x158   : > { %829 = vst [vmem:[%s1688_s8 + $0xb0] sm:$0xff] %v782_v0  ;;  %v744_v2 = vpop.f32.mrf.mxu0  ;;  %v764_v3 = vpop.f32.mrf.mxu1 }
 0x159   : > { %837 = vst [vmem:[%s1688_s8 + $0xf0] sm:$0xff] %v802_v1 }
 0x15a   : > { %814 = vst [vmem:[%s1688_s8 + $0x38] sm:$0xff] %v744_v2 }
 0x15b   : > { %822 = vst [vmem:[%s1688_s8 + $0x78] sm:$0xff] %v764_v3 }
 0x15f   : > { %v784_v4 = vpop.f32.mrf.mxu2  ;;  %v804_v5 = vpop.f32.mrf.mxu3 }
 0x160   : > { %830 = vst [vmem:[%s1688_s8 + $0xb8] sm:$0xff] %v784_v4 }
 0x161   : > { %838 = vst [vmem:[%s1688_s8 + $0xf8] sm:$0xff] %v804_v5 }
 0x162   : > { %1404 = shalt.err (!%p1401_p7)
}
 0x163   : > { %s1512_s12 = smov 128   ;;  %s1513_s8 = smov 8  }
 0x164   : > { %1167 = dma.vmem_to_hbm [thread:$0]  (%p1613_p10), %s855_s9, 4096, %s857_s1, %s840_s28, %s1512_s12, %s1512_s12, %s1513_s8  }
 0x165 PF: > { %s2071_s29 = sld [smem:[#allocation15_spill]] }
 0x166   : > { %s2072_s24 = sld [smem:[#allocation13_spill]] }
 0x16b   : > { %p1189_p8 = scmp.ge.s32.totalorder %s2071_s29, 2 }
 0x16c   : > { %s871_s27 = sand.u32 1, %s2072_s24  }
 0x16d   : > { %p1181_p4 = pnand %p1189_p8, %p1618_p12  ;;  %s872_s23 = scalar_lea.sflag [#allocation5], %s871_s27 }
 0x16f   : > { %p1182_p9 = pneg %p1181_p4 }
 0x171   : > { %1458 = dma.done.wait (%p1182_p9), %s872_s23, 4096  }
 0x172   : > { %1460 = vsyncadd (%p1182_p9), %s872_s23, 4294963200  ;;  %s20_s6 = sadd.s32 1, %s2071_s29   ;;  %s2074_s18 = sld [smem:[#allocation14_spill]] }
 0x173   : > { %p17_p11 = scmp.ge.s32.totalorder %s20_s6, 6   ;;  %s2075_s30 = sld [smem:[#allocation17_spill]] }
 0x174   : > { %s2076_s12 = smov %s1467_s13  ;;  %s2077_s13 = smov %s1471_s14 }
 0x175   : > { %s2078_s14 = smov %s1668_s22  ;;  %s2079_s15 = smov %s1479_s16 }
 0x176   : > { %s2080_s16 = smov %s1483_s17  ;;  %s2081_s17 = smov %s1663_s20 }
 0x177   : > { %s2082_s19 = smov %s1499_s21  ;;  %s2084_s21 = smov %s2091_s11 }
 0x178   : > { %s2085_s22 = smov %s20_s6  ;;  %19 = sbr.rel (!%p17_p11) target bundleno = 13 (0xd), region = 92 }
 0x179   : > { %s2083_s20 = smov %s2075_s30 }
 0x17d   :  { %878 = vsyncpa [#allocation4], 1 }
 0x17e   :  { %880 = vsyncpa [#allocation4 + $0x1], 1 }
 0x17f   :  { %881 = vsyncpa [#allocation7], 1 }
 0x180   :  { %882 = vsyncpa [#allocation5], 1 }
 0x181   :  { %884 = vsyncpa [#allocation5 + $0x1], 1 }

</bundles_post_ra>
